<compile_context>
chip_gen: v5e
topology: v5e:2x2
jax: 0.10.0
libtpu: 0.0.40
codegen_flags: <defaults>
</compile_context>

<pallas_src>
import jax
import jax.numpy as jnp
from jax.experimental import pallas as pl
from jax.experimental.pallas import tpu as pltpu


def _mlp_kernel(x_ref,
                w1_ref, b1_ref,
                w2_ref, b2_ref,
                w3_ref, b3_ref,
                w4_ref, b4_ref,
                o_ref):
    """One batch tile of the fused 4-layer MLP. Matmuls run in the weights'
    dtype (bf16 or f32) with f32 accumulation; elementwise ops stay f32."""
    mm_dtype = w1_ref.dtype
    x = x_ref[...]

    # fc1 + ReLU  (dropout = identity in eval mode)
    h = jnp.dot(x, w1_ref[...], preferred_element_type=jnp.float32) + b1_ref[...]
    h = jnp.maximum(h, 0.0)

    # fc2 + ReLU  (dropout = identity in eval mode)
    h = jnp.dot(h.astype(mm_dtype), w2_ref[...],
                preferred_element_type=jnp.float32) + b2_ref[...]
    h = jnp.maximum(h, 0.0)

    # fc3 + ReLU
    h = jnp.dot(h.astype(mm_dtype), w3_ref[...],
                preferred_element_type=jnp.float32) + b3_ref[...]
    h = jnp.maximum(h, 0.0)

    # fc4 (no activation)
    out = jnp.dot(h.astype(mm_dtype), w4_ref[...],
                  preferred_element_type=jnp.float32) + b4_ref[...]
    o_ref[...] = out.astype(o_ref.dtype)


def _const_spec(shape):
    """Full-array block that revisits the same block every grid step, so the
    operand stays resident in VMEM (no re-DMA across the batch grid)."""
    return pl.BlockSpec(tuple(shape), lambda i: (0,) * len(shape))


def enhanced_ot_map_nn(x, params, *, block_batch=1024,
                       compute_dtype=jnp.bfloat16):
    """Fused MLP forward with batch-grid tiling.

    x: (batch, input_dim) float32
    params: [(w1,b1),...,(w4,b4)] with w_i stored (in_features, out_features).
    """
    (w1, b1), (w2, b2), (w3, b3), (w4, b4) = params
    batch, input_dim = x.shape
    hidden_dim = w1.shape[1]
    output_dim = w4.shape[1]
    out_dtype = x.dtype

    # Batch tile: multiple of 8 (sublane rule), no larger than needed.
    tb = max(8, min(int(block_batch), batch))
    tb = ((tb + 7) // 8) * 8
    num_blocks = -(-batch // tb)
    padded_batch = num_blocks * tb
    if padded_batch != batch:
        x = jnp.pad(x, ((0, padded_batch - batch), (0, 0)))

    # bf16 on the MXU / HBM path, f32 biases for f32 elementwise.
    xc = x.astype(compute_dtype)
    w1c, w2c, w3c, w4c = (w.astype(compute_dtype) for w in (w1, w2, w3, w4))
    b1f, b2f, b3f, b4f = (b.astype(jnp.float32) for b in (b1, b2, b3, b4))

    flops = 2 * padded_batch * (input_dim * hidden_dim
                                + 2 * hidden_dim * hidden_dim
                                + hidden_dim * output_dim)
    bytes_accessed = (
        padded_batch * input_dim * jnp.dtype(compute_dtype).itemsize
        + padded_batch * output_dim * jnp.dtype(out_dtype).itemsize
        + sum(int(w.size) * w.dtype.itemsize for w in (w1c, w2c, w3c, w4c))
        + sum(int(b.size) * b.dtype.itemsize for b in (b1f, b2f, b3f, b4f)))
    cost = pl.CostEstimate(flops=flops, transcendentals=0,
                           bytes_accessed=bytes_accessed)

    out = pl.pallas_call(
        _mlp_kernel,
        out_shape=jax.ShapeDtypeStruct((padded_batch, output_dim), out_dtype),
        grid=(num_blocks,),
        in_specs=[
            pl.BlockSpec((tb, input_dim), lambda i: (i, 0)),
            _const_spec(w1c.shape), _const_spec(b1f.shape),
            _const_spec(w2c.shape), _const_spec(b2f.shape),
            _const_spec(w3c.shape), _const_spec(b3f.shape),
            _const_spec(w4c.shape), _const_spec(b4f.shape),
        ],
        out_specs=pl.BlockSpec((tb, output_dim), lambda i: (i, 0)),
        compiler_params=pltpu.CompilerParams(
            dimension_semantics=("parallel",)),
        cost_estimate=cost,
    )(xc, w1c, b1f, w2c, b2f, w3c, b3f, w4c, b4f)

    return out[:batch]


def init_params(key, input_dim, hidden_dim, output_dim, dtype=jnp.float32):
    """Parameter init mimicking PyTorch nn.Linear default
    (uniform(-1/sqrt(fan_in), 1/sqrt(fan_in))). Weights stored (in, out)."""
    dims = [(input_dim, hidden_dim),
            (hidden_dim, hidden_dim),
            (hidden_dim, hidden_dim),
            (hidden_dim, output_dim)]
    params = []
    for (fan_in, fan_out) in dims:
        key, kw, kb = jax.random.split(key, 3)
        bound = 1.0 / (fan_in ** 0.5)
        w = jax.random.uniform(kw, (fan_in, fan_out), dtype, -bound, bound)
        # bias kept 2D (1, fan_out) for clean lane-aligned broadcast on TPU
        b = jax.random.uniform(kb, (1, fan_out), dtype, -bound, bound)
        params.append((w, b))
    return params


def reference_forward(x, params):
    """Plain-JAX f32 reference (eval-mode forward)."""
    (w1, b1), (w2, b2), (w3, b3), (w4, b4) = params
    h = jnp.maximum(x @ w1 + b1, 0.0)
    h = jnp.maximum(h @ w2 + b2, 0.0)
    h = jnp.maximum(h @ w3 + b3, 0.0)
    return h @ w4 + b4


if __name__ == "__main__":
    key = jax.random.PRNGKey(0)

    input_dim = 16
    hidden_dim = 32
    output_dim = 16

    params = init_params(key, input_dim, hidden_dim, output_dim)

    # --- Test 1: f32 path, tiny batch (grid of 1), tight tolerance ---------
    key, kx = jax.random.split(key)
    x_small = jax.random.normal(kx, (8, input_dim), jnp.float32)
    out_f32 = enhanced_ot_map_nn(x_small, params, compute_dtype=jnp.float32)
    out_f32 = jax.block_until_ready(out_f32)
    ref_small = reference_forward(x_small, params)
    assert out_f32.shape == (8, output_dim)
    assert jnp.allclose(out_f32, ref_small, atol=1e-5, rtol=1e-5), \
        "f32 path mismatch vs reference"

    # --- Test 2: bf16 path, ragged batch + multi-step grid ------------------
    key, kx = jax.random.split(key)
    x = jax.random.normal(kx, (200, input_dim), jnp.float32)
    out_bf16 = enhanced_ot_map_nn(x, params, block_batch=64,
                                  compute_dtype=jnp.bfloat16)
    out_bf16 = jax.block_until_ready(out_bf16)
    ref = reference_forward(x, params)
    assert out_bf16.shape == (200, output_dim)
    assert jnp.allclose(out_bf16, ref, atol=5e-2, rtol=5e-2), \
        "bf16 path mismatch vs f32 reference"

    print("KERNEL_OK")
</pallas_src>

<mosaic_0001>
module attributes {stable_mosaic.version = 11 : i64} {
  func.func @_mlp_kernel(%arg0: i32, %arg1: memref<8x16xf32, #tpu.memory_space<vmem>>, %arg2: memref<16x32xf32, #tpu.memory_space<vmem>>, %arg3: memref<1x32xf32, #tpu.memory_space<vmem>>, %arg4: memref<32x32xf32, #tpu.memory_space<vmem>>, %arg5: memref<1x32xf32, #tpu.memory_space<vmem>>, %arg6: memref<32x32xf32, #tpu.memory_space<vmem>>, %arg7: memref<1x32xf32, #tpu.memory_space<vmem>>, %arg8: memref<32x16xf32, #tpu.memory_space<vmem>>, %arg9: memref<1x16xf32, #tpu.memory_space<vmem>>, %arg10: memref<8x16xf32, #tpu.memory_space<vmem>>) attributes {dimension_semantics = [#tpu.dimension_semantics<parallel>], iteration_bounds = array<i64: 1>, scalar_prefetch = 0 : i64, scratch_operands = 0 : i64, tpu.core_type = #tpu.core_type<tc>, window_params = [{transform_indices = @transform_0, window_bounds = array<i64: 8, 16>}, {pipeline_mode = #tpu.pipeline_mode<synchronous>, transform_indices = @transform_1, window_bounds = array<i64: 16, 32>}, {pipeline_mode = #tpu.pipeline_mode<synchronous>, transform_indices = @transform_2, window_bounds = array<i64: 1, 32>}, {pipeline_mode = #tpu.pipeline_mode<synchronous>, transform_indices = @transform_3, window_bounds = array<i64: 32, 32>}, {pipeline_mode = #tpu.pipeline_mode<synchronous>, transform_indices = @transform_4, window_bounds = array<i64: 1, 32>}, {pipeline_mode = #tpu.pipeline_mode<synchronous>, transform_indices = @transform_5, window_bounds = array<i64: 32, 32>}, {pipeline_mode = #tpu.pipeline_mode<synchronous>, transform_indices = @transform_6, window_bounds = array<i64: 1, 32>}, {pipeline_mode = #tpu.pipeline_mode<synchronous>, transform_indices = @transform_7, window_bounds = array<i64: 32, 16>}, {pipeline_mode = #tpu.pipeline_mode<synchronous>, transform_indices = @transform_8, window_bounds = array<i64: 1, 16>}, {transform_indices = @transform_9, window_bounds = array<i64: 8, 16>}]} {
    %c0 = arith.constant 0 : index
    %c0_0 = arith.constant 0 : index
    %0 = vector.load %arg1[%c0, %c0_0] : memref<8x16xf32, #tpu.memory_space<vmem>>, vector<8x16xf32>
    %c0_1 = arith.constant 0 : index
    %c0_2 = arith.constant 0 : index
    %1 = vector.load %arg2[%c0_1, %c0_2] : memref<16x32xf32, #tpu.memory_space<vmem>>, vector<16x32xf32>
    %cst = arith.constant dense<0.000000e+00> : vector<8x32xf32>
    %2 = tpu.matmul %0, %1, %cst {dimension_numbers = #tpu.dot_dimension_numbers<[1], [0], [0], [1], [0, 0, 1, 1], [], []>} : vector<8x16xf32>, vector<16x32xf32>, vector<8x32xf32> -> vector<8x32xf32>
    %c0_3 = arith.constant 0 : index
    %c0_4 = arith.constant 0 : index
    %3 = vector.load %arg3[%c0_3, %c0_4] : memref<1x32xf32, #tpu.memory_space<vmem>>, vector<1x32xf32>
    %4 = vector.broadcast %3 : vector<1x32xf32> to vector<8x32xf32>
    %5 = arith.addf %2, %4 : vector<8x32xf32>
    %cst_5 = arith.constant 0.000000e+00 : f32
    %6 = vector.broadcast %cst_5 : f32 to vector<8x32xf32>
    %7 = arith.maximumf %5, %6 : vector<8x32xf32>
    %c0_6 = arith.constant 0 : index
    %c0_7 = arith.constant 0 : index
    %8 = vector.load %arg4[%c0_6, %c0_7] : memref<32x32xf32, #tpu.memory_space<vmem>>, vector<32x32xf32>
    %cst_8 = arith.constant dense<0.000000e+00> : vector<8x32xf32>
    %9 = tpu.matmul %7, %8, %cst_8 {dimension_numbers = #tpu.dot_dimension_numbers<[1], [0], [0], [1], [0, 0, 1, 1], [], []>} : vector<8x32xf32>, vector<32x32xf32>, vector<8x32xf32> -> vector<8x32xf32>
    %c0_9 = arith.constant 0 : index
    %c0_10 = arith.constant 0 : index
    %10 = vector.load %arg5[%c0_9, %c0_10] : memref<1x32xf32, #tpu.memory_space<vmem>>, vector<1x32xf32>
    %11 = vector.broadcast %10 : vector<1x32xf32> to vector<8x32xf32>
    %12 = arith.addf %9, %11 : vector<8x32xf32>
    %cst_11 = arith.constant 0.000000e+00 : f32
    %13 = vector.broadcast %cst_11 : f32 to vector<8x32xf32>
    %14 = arith.maximumf %12, %13 : vector<8x32xf32>
    %c0_12 = arith.constant 0 : index
    %c0_13 = arith.constant 0 : index
    %15 = vector.load %arg6[%c0_12, %c0_13] : memref<32x32xf32, #tpu.memory_space<vmem>>, vector<32x32xf32>
    %cst_14 = arith.constant dense<0.000000e+00> : vector<8x32xf32>
    %16 = tpu.matmul %14, %15, %cst_14 {dimension_numbers = #tpu.dot_dimension_numbers<[1], [0], [0], [1], [0, 0, 1, 1], [], []>} : vector<8x32xf32>, vector<32x32xf32>, vector<8x32xf32> -> vector<8x32xf32>
    %c0_15 = arith.constant 0 : index
    %c0_16 = arith.constant 0 : index
    %17 = vector.load %arg7[%c0_15, %c0_16] : memref<1x32xf32, #tpu.memory_space<vmem>>, vector<1x32xf32>
    %18 = vector.broadcast %17 : vector<1x32xf32> to vector<8x32xf32>
    %19 = arith.addf %16, %18 : vector<8x32xf32>
    %cst_17 = arith.constant 0.000000e+00 : f32
    %20 = vector.broadcast %cst_17 : f32 to vector<8x32xf32>
    %21 = arith.maximumf %19, %20 : vector<8x32xf32>
    %c0_18 = arith.constant 0 : index
    %c0_19 = arith.constant 0 : index
    %22 = vector.load %arg8[%c0_18, %c0_19] : memref<32x16xf32, #tpu.memory_space<vmem>>, vector<32x16xf32>
    %cst_20 = arith.constant dense<0.000000e+00> : vector<8x16xf32>
    %23 = tpu.matmul %21, %22, %cst_20 {dimension_numbers = #tpu.dot_dimension_numbers<[1], [0], [0], [1], [0, 0, 1, 1], [], []>} : vector<8x32xf32>, vector<32x16xf32>, vector<8x16xf32> -> vector<8x16xf32>
    %c0_21 = arith.constant 0 : index
    %c0_22 = arith.constant 0 : index
    %24 = vector.load %arg9[%c0_21, %c0_22] : memref<1x16xf32, #tpu.memory_space<vmem>>, vector<1x16xf32>
    %25 = vector.broadcast %24 : vector<1x16xf32> to vector<8x16xf32>
    %26 = arith.addf %23, %25 : vector<8x16xf32>
    %c0_23 = arith.constant 0 : index
    %c0_24 = arith.constant 0 : index
    %27 = vector.load %arg10[%c0_23, %c0_24] : memref<8x16xf32, #tpu.memory_space<vmem>>, vector<8x16xf32>
    tpu.vector_store %arg10[%c0_23, %c0_24], %26 {strides = array<i32>} : memref<8x16xf32, #tpu.memory_space<vmem>>, vector<8x16xf32>,
    return
  }
  func.func @transform_0(%arg0: i32) -> (i32, i32) {
    %c0_i32 = arith.constant 0 : i32
    %c0_i32_0 = arith.constant 0 : i32
    return %arg0, %c0_i32 : i32, i32
  }
  func.func @transform_1(%arg0: i32) -> (i32, i32) {
    %c0_i32 = arith.constant 0 : i32
    %c0_i32_0 = arith.constant 0 : i32
    %c0_i32_1 = arith.constant 0 : i32
    return %c0_i32, %c0_i32_0 : i32, i32
  }
  func.func @transform_2(%arg0: i32) -> (i32, i32) {
    %c0_i32 = arith.constant 0 : i32
    %c0_i32_0 = arith.constant 0 : i32
    %c0_i32_1 = arith.constant 0 : i32
    return %c0_i32, %c0_i32_0 : i32, i32
  }
  func.func @transform_3(%arg0: i32) -> (i32, i32) {
    %c0_i32 = arith.constant 0 : i32
    %c0_i32_0 = arith.constant 0 : i32
    %c0_i32_1 = arith.constant 0 : i32
    return %c0_i32, %c0_i32_0 : i32, i32
  }
  func.func @transform_4(%arg0: i32) -> (i32, i32) {
    %c0_i32 = arith.constant 0 : i32
    %c0_i32_0 = arith.constant 0 : i32
    %c0_i32_1 = arith.constant 0 : i32
    return %c0_i32, %c0_i32_0 : i32, i32
  }
  func.func @transform_5(%arg0: i32) -> (i32, i32) {
    %c0_i32 = arith.constant 0 : i32
    %c0_i32_0 = arith.constant 0 : i32
    %c0_i32_1 = arith.constant 0 : i32
    return %c0_i32, %c0_i32_0 : i32, i32
  }
  func.func @transform_6(%arg0: i32) -> (i32, i32) {
    %c0_i32 = arith.constant 0 : i32
    %c0_i32_0 = arith.constant 0 : i32
    %c0_i32_1 = arith.constant 0 : i32
    return %c0_i32, %c0_i32_0 : i32, i32
  }
  func.func @transform_7(%arg0: i32) -> (i32, i32) {
    %c0_i32 = arith.constant 0 : i32
    %c0_i32_0 = arith.constant 0 : i32
    %c0_i32_1 = arith.constant 0 : i32
    return %c0_i32, %c0_i32_0 : i32, i32
  }
  func.func @transform_8(%arg0: i32) -> (i32, i32) {
    %c0_i32 = arith.constant 0 : i32
    %c0_i32_0 = arith.constant 0 : i32
    %c0_i32_1 = arith.constant 0 : i32
    return %c0_i32, %c0_i32_0 : i32, i32
  }
  func.func @transform_9(%arg0: i32) -> (i32, i32) {
    %c0_i32 = arith.constant 0 : i32
    %c0_i32_0 = arith.constant 0 : i32
    return %arg0, %c0_i32 : i32, i32
  }
}

</mosaic_0001>

<bundles_post_ra>
// kernel: tpu_custom_call.1
= control target key start
LH: loop header
LB: loop body
LE: loop exit
PB: predicated region body
PF: predicated region fallthrough
CT: control target
= control target key end

     0   :  { %14 = vsyncpa [#allocation3], 0  ;;  %s412_s0 = inlined_call_operand.hbm [shape: f32[8,16], index: 0, kind: input, shape index: {}]   ;;  %s413_s1 = inlined_call_operand.vmem [shape: f32[16,32], index: 1, kind: input, shape index: {}]   ;;  %s414_s2 = inlined_call_operand.vmem [shape: f32[1,32], index: 2, kind: input, shape index: {}]   ;;  %s415_s3 = inlined_call_operand.vmem [shape: f32[32,32], index: 3, kind: input, shape index: {}]   ;;  %s416_s4 = inlined_call_operand.vmem [shape: f32[1,32], index: 4, kind: input, shape index: {}]   ;;  %s417_s5 = inlined_call_operand.hbm [shape: f32[32,32], index: 5, kind: input, shape index: {}]   ;;  %s418_s6 = inlined_call_operand.vmem [shape: f32[1,32], index: 6, kind: input, shape index: {}]   ;;  %s419_s7 = inlined_call_operand.vmem [shape: f32[32,16], index: 7, kind: input, shape index: {}]   ;;  %s420_s8 = inlined_call_operand.vmem [shape: f32[1,16], index: 8, kind: input, shape index: {}]   ;;  %s421_s9 = inlined_call_operand.hbm [shape: f32[8,16], index: 9, kind: output, shape index: {}]  }
   0x1   :  { %15 = vsyncpa [#allocation6], 0 }
   0x2   :  { %16 = vsyncpa [#allocation4], 0  ;;  %s22_s11 = sshll.u32 %s412_s0, 4  ;;  %s301_s12 = smov [#allocation2]   ;;  %s23_s11 = int_to_ptr.hbm [resolvable:$true] %s22_s11 }
   0x3   :  { %s24_s13 = sshll.u32 %s301_s12, 4  ;;  %s40_s16 = sshll.u32 %s417_s5, 4  ;;  %s25_s13 = int_to_ptr.vmem [resolvable:$true] %s24_s13  ;;  %s41_s16 = int_to_ptr.hbm [resolvable:$true] %s40_s16 }
   0x4   :  { %27 = dma.hbm_to_vmem [thread:$0]  %s23_s11, 128, %s25_s13, [#allocation3]  }
   0x5   :  { %s302_s17 = smov [#allocation5]   ;;  %s303_s19 = smov 128  }
   0x6   :  { %s42_s18 = sshll.u32 %s302_s17, 4  ;;  %s304_s20 = smov 8   ;;  %s43_s18 = int_to_ptr.vmem [resolvable:$true] %s42_s18 }
   0x7   :  { %48 = dma.hbm_to_vmem [thread:$0]  %s41_s16, 512, %s43_s18, [#allocation6], %s303_s19, %s303_s19, %s304_s20  }
   0x8   :  { %295 = dma.done.wait [#allocation3], 128  }
   0x9   :  { %296 = vsyncadd [#allocation3], 4294967168 }
   0xa   :  { %297 = dma.done.wait [#allocation6], 512  }
   0xb   :  { %298 = vsyncadd [#allocation6], 4294966784  ;;  %v65_v0 = vld [vmem:[%s413_s1 + $0x8] sm:$0xff]  ;;  %v64_v1 = vld [vmem:[%s413_s1] sm:$0xff]  ;;  %vm70_vm0 = vcmask 130048   ;;  %vm103_vm1 = vcmask 261120  }
   0xc   :  { %88 = vmatpush.msra.mxu0 %v65_v0  ;;  %v63_v2 = vld [vmem:[#allocation2] sm:$0xff]  ;;  %v98_v3 = vld [vmem:[%s415_s3 + $0x18] sm:$0xff]  ;;  %v97_v4 = vld [vmem:[%s415_s3 + $0x10] sm:$0xff]  ;;  %s305_s21 = smov [#allocation7]  }
   0xd   :  { %119 = vmatpush.msra.mxu1 %v98_v3  ;;  %v96_v5 = vld [vmem:[%s415_s3 + $0x8] sm:$0xff]  ;;  %v95_v6 = vld [vmem:[%s415_s3] sm:$0xff]  ;;  %v130_v12 = vld [vmem:[#allocation5 + $0x10] sm:$0xff]  ;;  %s197_s22 = sshll.u32 %s305_s21, 4  ;;  %s198_s22 = int_to_ptr.vmem [resolvable:$true] %s197_s22 }
   0xe   :  { %89 = vmatpush.msra.mxu0 %v64_v1  ;;  %v131_v7 = vld [vmem:[#allocation5 + $0x18] sm:$0xff]  ;;  %v129_v13 = vld [vmem:[#allocation5 + $0x8] sm:$0xff]  ;;  %v128_v14 = vld [vmem:[#allocation5] sm:$0xff] }
   0xf   :  { %210 = vmatmul.msk.f32.vlgmr.msra.gmra.mxu0 %vm70_vm0, %v63_v2  ;;  %120 = vmatpush.msra.mxu1 %v97_v4  ;;  %v219_v8 = vld [vmem:[%s414_s2] ss:$0 sm:$0xff]  ;;  %v163_v15 = vld [vmem:[%s419_s7 + $0x18] sm:$0xff]  ;;  %v162_v20 = vld [vmem:[%s419_s7 + $0x10] sm:$0xff] }
  0x10   :  { %151 = vmatpush.msra.mxu2 %v131_v7  ;;  %183 = vmatpush.msra.mxu3 %v163_v15  ;;  %v220_v16 = vld [vmem:[%s416_s4] ss:$0 sm:$0xff]  ;;  %v161_v21 = vld [vmem:[%s419_s7 + $0x8] sm:$0xff] }
  0x11   :  { %121 = vmatpush.msra.mxu1 %v96_v5  ;;  %v160_v22 = vld [vmem:[%s419_s7] sm:$0xff]  ;;  %s199_s7 = sshll.u32 %s421_s9, 4  ;;  %s200_s7 = int_to_ptr.hbm [resolvable:$true] %s199_s7 }
  0x12   :  { %152 = vmatpush.msra.mxu2 %v130_v12  ;;  %184 = vmatpush.msra.mxu3 %v162_v20  ;;  %v221_v23 = vld [vmem:[%s418_s6] ss:$0 sm:$0xff] }
  0x13   :  { %122 = vmatpush.msra.mxu1 %v95_v6  ;;  %v222_v27 = vld [vmem:[%s420_s8] ss:$0 sm:$0xff] }
  0x14   :  { %153 = vmatpush.msra.mxu2 %v129_v13  ;;  %185 = vmatpush.msra.mxu3 %v161_v21 }
  0x16   :  { %154 = vmatpush.msra.mxu2 %v128_v14  ;;  %186 = vmatpush.msra.mxu3 %v160_v22 }
  0x8c   :  { %v91_v9 = vpop.f32.mrf.mxu0 }
  0x8d   :  { %v92_v10 = vadd.f32 %v219_v8, %v91_v9 }
  0x8f   :  { %v94_v11 = vmax.f32 %v92_v10, 0.0 }
  0x91   :  { %211 = vmatmul.msk.f32.vlgmr.msra.gmra.mxu1 %vm103_vm1, %v94_v11 }
 0x10e   :  { %v124_v17 = vpop.f32.mrf.mxu1 }
 0x10f   :  { %v125_v18 = vadd.f32 %v220_v16, %v124_v17 }
 0x111   :  { %v127_v19 = vmax.f32 %v125_v18, 0.0 }
 0x113   :  { %212 = vmatmul.msk.f32.vlgmr.msra.gmra.mxu2 %vm103_vm1, %v127_v19 }
 0x196   :  { %v156_v24 = vpop.f32.mrf.mxu2 }
 0x197   :  { %v157_v25 = vadd.f32 %v221_v23, %v156_v24 }
 0x199   :  { %v159_v26 = vmax.f32 %v157_v25, 0.0 }
 0x19b   :  { %213 = vmatmul.msk.f32.vlgmr.msra.gmra.mxu3 %vm103_vm1, %v159_v26 }
 0x21e   :  { %v188_v28 = vpop.f32.mrf.mxu3 }
 0x21f   :  { %v189_v29 = vadd.f32 %v222_v27, %v188_v28 }
 0x221   :  { %191 = vst.msk [vmem:[#allocation7] sm:$0xff] %vm70_vm0, %v189_v29 }
 0x222   :  { %202 = dma.vmem_to_hbm [thread:$0]  %s198_s22, 128, %s200_s7, [#allocation4]  }
 0x223   :  { %299 = dma.done.wait [#allocation4], 128  }
 0x224   :  { %300 = vsyncadd [#allocation4], 4294967168 }
 0x225   :  { %207 = vsyncpa [#allocation3], 1 }
 0x226   :  { %208 = vsyncpa [#allocation6], 1 }
 0x227   :  { %209 = vsyncpa [#allocation4], 1 }

</bundles_post_ra>
